<compile_context>
chip_gen: v5e
topology: v5e:2x2
jax: 0.10.0
libtpu: 0.0.40
codegen_flags: <defaults>
</compile_context>

<pallas_src>
import functools
import jax
import jax.numpy as jnp
from jax.experimental import pallas as pl
from jax.experimental.pallas import tpu as pltpu


def _round_up(x, m):
    return ((x + m - 1) // m) * m


def _compiler_params(semantics, block_bytes=0):
    kw = {"dimension_semantics": semantics}
    # Raise the scoped-VMEM limit when the (double-buffered) block working set exceeds the
    # 16 MiB v5e default; capped at 64 MiB so it stays valid on v7x as well.
    need = 2 * block_bytes + (2 << 20)
    if need > (16 << 20):
        kw["vmem_limit_bytes"] = int(min(need, 64 << 20))
    return pltpu.CompilerParams(**kw)


# ----------------------------------------------------------------------------
# Pallas kernels
# ----------------------------------------------------------------------------
def _linear_kernel(x_ref, w_ref, b_ref, o_ref):
    # o = x @ w + b   (MXU matmul, f32 accumulate, bias epilogue fused)
    acc = jnp.dot(x_ref[...], w_ref[...], preferred_element_type=jnp.float32)
    o_ref[...] = (acc + b_ref[...]).astype(o_ref.dtype)


def pallas_linear(x, w, b, *, max_tm=256):
    """y = x @ w + b.  Single block for small M, 256-row tiles for large M."""
    M, K = x.shape
    Kw, N = w.shape
    assert K == Kw
    if M <= max_tm:
        tm = _round_up(max(M, 8), 8)
        Mpad = tm
    else:
        tm = max_tm
        Mpad = _round_up(M, tm)
    xp = x if Mpad == M else jnp.pad(x, ((0, Mpad - M), (0, 0)))
    blk_bytes = 4 * (tm * K + K * N + N + tm * N)
    out = pl.pallas_call(
        _linear_kernel,
        out_shape=jax.ShapeDtypeStruct((Mpad, N), jnp.float32),
        grid=(Mpad // tm,),
        in_specs=[
            pl.BlockSpec((tm, K), lambda i: (i, 0)),
            pl.BlockSpec((K, N), lambda i: (0, 0)),
            pl.BlockSpec((1, N), lambda i: (0, 0)),
        ],
        out_specs=pl.BlockSpec((tm, N), lambda i: (i, 0)),
        compiler_params=_compiler_params(("parallel",), blk_bytes),
    )(xp, w, b.reshape(1, N))
    return out[:M]


def _graph_attn_kernel(q_ref, k_ref, v_ref, ek_ref, mask_ref, o_ref,
                       m_sc, l_sc, acc_sc, *, heads, d):
    """All heads in one kernel, online softmax over src tiles (grid axis 1)."""
    kv = pl.program_id(1)

    @pl.when(kv == 0)
    def _init():
        m_sc[...] = jnp.full(m_sc.shape, -1e30, jnp.float32)
        l_sc[...] = jnp.zeros(l_sc.shape, jnp.float32)
        acc_sc[...] = jnp.zeros(acc_sc.shape, jnp.float32)

    mask = mask_ref[...]                         # [tq, tk]  1.0 where edge src->dst exists
    addmask = (mask - 1.0) * 1e30                # additive mask (keeps running max valid)
    scale = 1.0 / jnp.sqrt(jnp.float32(d))

    q = q_ref[...]                               # [tq, hd]
    k = k_ref[...]                               # [tk, hd]
    v = v_ref[...]                               # [tk, hd]

    for h in range(heads):
        lo, hi = h * d, (h + 1) * d
        qh = q[:, lo:hi]                         # [tq, d]
        kh = k[:, lo:hi]                         # [tk, d]
        vh = v[:, lo:hi]                         # [tk, d]
        ekh = ek_ref[:, :, lo:hi]                # [tq, tk, d] per-(dst,src) edge projection

        s = jnp.dot(qh, kh.T, preferred_element_type=jnp.float32)
        # edge bias on keys: 'nd,nmd->nm' as a batched contraction
        s = s + jnp.einsum("bqd,bkd->bqk", qh[:, None, :], ekh,
                           preferred_element_type=jnp.float32)[:, 0, :]
        s = s * scale + addmask

        m_old = m_sc[:, h:h + 1]
        m_new = jnp.maximum(m_old, jnp.max(s, axis=-1, keepdims=True))
        a = jnp.exp(m_old - m_new)
        p = jnp.exp(s - m_new) * mask            # isolated rows stay all-zero (PyG semantics)

        l_sc[:, h:h + 1] = a * l_sc[:, h:h + 1] + jnp.sum(p, axis=-1, keepdims=True)
        pv = jnp.dot(p, vh, preferred_element_type=jnp.float32)
        # edge bias on values: 'nm,nmd->nd'
        pv = pv + jnp.einsum("bqk,bkd->bqd", p[:, None, :], ekh,
                             preferred_element_type=jnp.float32)[:, 0, :]
        acc_sc[:, lo:hi] = a * acc_sc[:, lo:hi] + pv
        m_sc[:, h:h + 1] = m_new

    @pl.when(kv == pl.num_programs(1) - 1)
    def _finalize():
        outs = []
        for h in range(heads):
            inv_l = pl.reciprocal(jnp.maximum(l_sc[:, h:h + 1], 1e-20), approx=True)
            outs.append(acc_sc[:, h * d:(h + 1) * d] * inv_l)
        o_ref[...] = jnp.concatenate(outs, axis=-1).astype(o_ref.dtype)


def pallas_graph_attention(q, k, v, ek_dense, mask, *, heads, d):
    """q,k,v:[Npad,hd]  ek_dense:[Npad,Npad,hd]  mask:[Npad,Npad] -> [Npad,hd]."""
    Npad, hd = q.shape
    if Npad <= 256:
        tq = tk = Npad               # single block — no grid overhead for small graphs
    else:
        tq, tk = 128, 256            # Npad padded to a multiple of 256 in this case
    grid = (Npad // tq, Npad // tk)
    blk_bytes = 4 * (tq * hd + 2 * tk * hd + tq * tk * hd + tq * tk + tq * hd)
    kern = functools.partial(_graph_attn_kernel, heads=heads, d=d)
    return pl.pallas_call(
        kern,
        out_shape=jax.ShapeDtypeStruct((Npad, hd), jnp.float32),
        grid=grid,
        in_specs=[
            pl.BlockSpec((tq, hd), lambda i, j: (i, 0)),
            pl.BlockSpec((tk, hd), lambda i, j: (j, 0)),
            pl.BlockSpec((tk, hd), lambda i, j: (j, 0)),
            pl.BlockSpec((tq, tk, hd), lambda i, j: (i, j, 0)),
            pl.BlockSpec((tq, tk), lambda i, j: (i, j)),
        ],
        out_specs=pl.BlockSpec((tq, hd), lambda i, j: (i, 0)),
        scratch_shapes=[
            pltpu.VMEM((tq, heads), jnp.float32),   # running max per head
            pltpu.VMEM((tq, heads), jnp.float32),   # running denom per head
            pltpu.VMEM((tq, hd), jnp.float32),      # output accumulator
        ],
        compiler_params=_compiler_params(("parallel", "arbitrary"), blk_bytes),
    )(q, k, v, ek_dense, mask)


def _gate_ffn_kernel(attn_ref, skip_ref, wb_ref, w1_ref, b1_ref, w2_ref, b2_ref, o_ref):
    """beta gate (split Wbeta — no concat, no width-1 store) + FFN + residual, all fused."""
    out = attn_ref[...]
    skip = skip_ref[...]
    hd = out.shape[-1]
    wb = wb_ref[...]
    g = (jnp.dot(out, wb[0:hd, :], preferred_element_type=jnp.float32)
         + jnp.dot(skip, wb[hd:2 * hd, :], preferred_element_type=jnp.float32)
         + jnp.dot(out - skip, wb[2 * hd:3 * hd, :], preferred_element_type=jnp.float32))
    beta = 1.0 / (1.0 + jnp.exp(-g))
    gated = beta * skip + (1.0 - beta) * out
    h = jnp.maximum(jnp.dot(gated, w1_ref[...], preferred_element_type=jnp.float32)
                    + b1_ref[...], 0.0)
    h = jnp.dot(h, w2_ref[...], preferred_element_type=jnp.float32) + b2_ref[...]
    o_ref[...] = (gated + h).astype(o_ref.dtype)


def pallas_gate_ffn(attn, skip, wbeta, w1, b1, w2, b2, *, max_tm=256):
    M, hd = attn.shape
    ff = w1.shape[1]
    if M <= max_tm:
        tm = _round_up(max(M, 8), 8)
        Mpad = tm
    else:
        tm = max_tm
        Mpad = _round_up(M, tm)
    ap = attn if Mpad == M else jnp.pad(attn, ((0, Mpad - M), (0, 0)))
    sp = skip if Mpad == M else jnp.pad(skip, ((0, Mpad - M), (0, 0)))
    blk_bytes = 4 * (2 * tm * hd + 3 * hd + hd * ff + ff + ff * hd + hd + tm * hd)
    out = pl.pallas_call(
        _gate_ffn_kernel,
        out_shape=jax.ShapeDtypeStruct((Mpad, hd), jnp.float32),
        grid=(Mpad // tm,),
        in_specs=[
            pl.BlockSpec((tm, hd), lambda i: (i, 0)),
            pl.BlockSpec((tm, hd), lambda i: (i, 0)),
            pl.BlockSpec((3 * hd, 1), lambda i: (0, 0)),
            pl.BlockSpec((hd, ff), lambda i: (0, 0)),
            pl.BlockSpec((1, ff), lambda i: (0, 0)),
            pl.BlockSpec((ff, hd), lambda i: (0, 0)),
            pl.BlockSpec((1, hd), lambda i: (0, 0)),
        ],
        out_specs=pl.BlockSpec((tm, hd), lambda i: (i, 0)),
        compiler_params=_compiler_params(("parallel",), blk_bytes),
    )(ap, sp, wbeta, w1, b1.reshape(1, ff), w2, b2.reshape(1, hd))
    return out[:M]


# ----------------------------------------------------------------------------
# Model (parameters + forward)
# ----------------------------------------------------------------------------
def init_params(key, *, in_channels, ff_dim, out_channels, heads, edge_dim,
                num_layers, num_class, sent_dim=1024):
    d = out_channels // heads
    hd = heads * d
    ks = iter(jax.random.split(key, 8 + num_layers * 16))

    def w(shape, scale=0.05):
        return jax.random.normal(next(ks), shape, jnp.float32) * scale

    params = {
        "sent_w": w((sent_dim, in_channels)),
        "sent_b": w((in_channels,)),
        "cls_w": w((out_channels, num_class)),
        "cls_b": w((num_class,)),
        "layers": [],
    }
    for li in range(num_layers):
        cin = in_channels if li == 0 else out_channels
        params["layers"].append({
            # Q/K/V/root-skip projections fused into one lane-dense [cin, 4*hd] matmul
            "Wqkvs": w((cin, 4 * hd)), "bqkvs": w((4 * hd,)),
            "We": w((edge_dim, hd)),                    # lin_edge (no bias)
            "Wbeta": w((3 * hd, 1)),                    # beta gate (no bias)
            "W1": w((hd, ff_dim)), "b1": w((ff_dim,)),  # FFN
            "W2": w((ff_dim, hd)), "b2": w((hd,)),
        })
    return params


def trmcn_layer(x, edge_attr, dst, src, mask, lp, *, heads, d, Npad):
    hd = heads * d

    # fused Q/K/V/skip projection (one matmul, 4*hd = 128-lane output)
    proj = pallas_linear(x, lp["Wqkvs"], lp["bqkvs"])
    q = proj[:, 0:hd]
    k = proj[:, hd:2 * hd]
    v = proj[:, 2 * hd:3 * hd]
    skip = proj[:, 3 * hd:4 * hd]

    # Per-edge projection scattered into dense [dst, src, hd] tensor (kernel consumption layout).
    # TODO(synk): data-dependent scatter has no clean Pallas equivalent; done in JAX. Duplicate
    # (dst,src) edges keep only the last edge's attributes (PyG multigraph softmax differs).
    ek = pallas_linear(edge_attr, lp["We"], jnp.zeros((hd,), jnp.float32))
    ek_dense = jnp.zeros((Npad, Npad, hd), jnp.float32).at[dst, src].set(ek)

    attn = pallas_graph_attention(q, k, v, ek_dense, mask, heads=heads, d=d)  # [Npad, hd]

    # root_weight skip + beta gating + FFN + residual, fused in one kernel
    return pallas_gate_ffn(attn, skip, lp["Wbeta"], lp["W1"], lp["b1"],
                           lp["W2"], lp["b2"])


def mental_model_forward(params, r_list, conv_len, edge_indices, edge_attrs,
                         *, heads, out_channels, residual=False):
    d = out_channels // heads

    # --- glue: replicate the PyTorch index/offset bookkeeping ---
    edge_attr = jnp.concatenate(edge_attrs, axis=0).astype(jnp.float32)
    r = jnp.concatenate(r_list, axis=0).astype(jnp.float32)

    offsets = []
    count = 0
    for i, l in enumerate(conv_len):
        ne = int(edge_indices[i].shape[1])
        offsets += [count] * ne
        count += int(l)
    offsets = jnp.asarray(offsets, jnp.int32)
    edge_index = jnp.concatenate(edge_indices, axis=1).astype(jnp.int32) + offsets[None, :]
    src, dst = edge_index[0], edge_index[1]

    N = r.shape[0]
    Npad = _round_up(N, 8) if N <= 256 else _round_up(N, 256)
    r_pad = jnp.pad(r, ((0, Npad - N), (0, 0)))

    # sent_map: Linear(1024 -> in_channels)
    graph_input = pallas_linear(r_pad, params["sent_w"], params["sent_b"])

    mask = jnp.zeros((Npad, Npad), jnp.float32).at[dst, src].set(1.0)

    x = graph_input
    for lp in params["layers"]:
        x = trmcn_layer(x, edge_attr, dst, src, mask, lp,
                        heads=heads, d=d, Npad=Npad)

    mental_emb = x  # dropout = identity (eval)
    if residual:
        mental_emb = mental_emb + graph_input

    logits = pallas_linear(mental_emb, params["cls_w"], params["cls_b"])
    return logits[:N]


# ----------------------------------------------------------------------------
if __name__ == "__main__":
    # small hyperparameters consistent with the module
    in_channels, ff_dim, out_channels, heads = 32, 64, 32, 4
    edge_dim, num_layers, num_class = 6, 2, 5

    params = init_params(jax.random.PRNGKey(1),
                         in_channels=in_channels, ff_dim=ff_dim,
                         out_channels=out_channels, heads=heads,
                         edge_dim=edge_dim, num_layers=num_layers,
                         num_class=num_class)

    # deterministic example inputs: 2 conversations, 6 utterances each, 10 edges each
    key = jax.random.PRNGKey(0)
    k1, k2, k3, k4, k5, k6 = jax.random.split(key, 6)
    conv_len = [6, 6]
    r_list = [jax.random.normal(k1, (6, 1024), jnp.float32),
              jax.random.normal(k2, (6, 1024), jnp.float32)]
    edge_indices = [jax.random.randint(k3, (2, 10), 0, 6),
                    jax.random.randint(k4, (2, 10), 0, 6)]
    edge_attrs = [jax.random.normal(k5, (10, edge_dim), jnp.float32),
                  jax.random.normal(k6, (10, edge_dim), jnp.float32)]

    logits = mental_model_forward(params, r_list, conv_len, edge_indices, edge_attrs,
                                  heads=heads, out_channels=out_channels)
    logits = jax.block_until_ready(logits)
    assert logits.shape == (sum(conv_len), num_class)
    assert bool(jnp.all(jnp.isfinite(logits)))
    print("KERNEL_OK")
</pallas_src>

<mosaic_0001>
module attributes {stable_mosaic.version = 11 : i64} {
  func.func @_linear_kernel(%arg0: i32, %arg1: memref<16x1024xf32, #tpu.memory_space<vmem>>, %arg2: memref<1024x32xf32, #tpu.memory_space<vmem>>, %arg3: memref<1x32xf32, #tpu.memory_space<vmem>>, %arg4: memref<16x32xf32, #tpu.memory_space<vmem>>) attributes {dimension_semantics = [#tpu.dimension_semantics<parallel>], iteration_bounds = array<i64: 1>, scalar_prefetch = 0 : i64, scratch_operands = 0 : i64, tpu.core_type = #tpu.core_type<tc>, window_params = [{transform_indices = @transform_0, window_bounds = array<i64: 16, 1024>}, {pipeline_mode = #tpu.pipeline_mode<synchronous>, transform_indices = @transform_1, window_bounds = array<i64: 1024, 32>}, {pipeline_mode = #tpu.pipeline_mode<synchronous>, transform_indices = @transform_2, window_bounds = array<i64: 1, 32>}, {transform_indices = @transform_3, window_bounds = array<i64: 16, 32>}]} {
    %c0 = arith.constant 0 : index
    %c0_0 = arith.constant 0 : index
    %0 = vector.load %arg1[%c0, %c0_0] : memref<16x1024xf32, #tpu.memory_space<vmem>>, vector<16x1024xf32>
    %c0_1 = arith.constant 0 : index
    %c0_2 = arith.constant 0 : index
    %1 = vector.load %arg2[%c0_1, %c0_2] : memref<1024x32xf32, #tpu.memory_space<vmem>>, vector<1024x32xf32>
    %cst = arith.constant dense<0.000000e+00> : vector<16x32xf32>
    %2 = tpu.matmul %0, %1, %cst {dimension_numbers = #tpu.dot_dimension_numbers<[1], [0], [0], [1], [0, 0, 1, 1], [], []>} : vector<16x1024xf32>, vector<1024x32xf32>, vector<16x32xf32> -> vector<16x32xf32>
    %c0_3 = arith.constant 0 : index
    %c0_4 = arith.constant 0 : index
    %3 = vector.load %arg3[%c0_3, %c0_4] : memref<1x32xf32, #tpu.memory_space<vmem>>, vector<1x32xf32>
    %4 = vector.broadcast %3 : vector<1x32xf32> to vector<16x32xf32>
    %5 = arith.addf %2, %4 : vector<16x32xf32>
    %c0_5 = arith.constant 0 : index
    %c0_6 = arith.constant 0 : index
    %6 = vector.load %arg4[%c0_5, %c0_6] : memref<16x32xf32, #tpu.memory_space<vmem>>, vector<16x32xf32>
    tpu.vector_store %arg4[%c0_5, %c0_6], %5 {strides = array<i32>} : memref<16x32xf32, #tpu.memory_space<vmem>>, vector<16x32xf32>,
    return
  }
  func.func @transform_0(%arg0: i32) -> (i32, i32) {
    %c0_i32 = arith.constant 0 : i32
    %c0_i32_0 = arith.constant 0 : i32
    return %arg0, %c0_i32 : i32, i32
  }
  func.func @transform_1(%arg0: i32) -> (i32, i32) {
    %c0_i32 = arith.constant 0 : i32
    %c0_i32_0 = arith.constant 0 : i32
    %c0_i32_1 = arith.constant 0 : i32
    return %c0_i32, %c0_i32_0 : i32, i32
  }
  func.func @transform_2(%arg0: i32) -> (i32, i32) {
    %c0_i32 = arith.constant 0 : i32
    %c0_i32_0 = arith.constant 0 : i32
    %c0_i32_1 = arith.constant 0 : i32
    return %c0_i32, %c0_i32_0 : i32, i32
  }
  func.func @transform_3(%arg0: i32) -> (i32, i32) {
    %c0_i32 = arith.constant 0 : i32
    %c0_i32_0 = arith.constant 0 : i32
    return %arg0, %c0_i32 : i32, i32
  }
}

</mosaic_0001>

<bundles_post_ra>
// kernel: tpu_custom_call.1
= control target key start
LH: loop header
LB: loop body
LE: loop exit
PB: predicated region body
PF: predicated region fallthrough
CT: control target
= control target key end

     0   :  { %s859_s0 = inlined_call_operand.vmem [shape: f32[16,1024], index: 0, kind: input, shape index: {}]   ;;  %s860_s1 = inlined_call_operand.vmem [shape: f32[1024,32], index: 1, kind: input, shape index: {}]   ;;  %s861_s2 = inlined_call_operand.vmem [shape: f32[1,32], index: 2, kind: input, shape index: {}]   ;;  %s862_s3 = inlined_call_operand.hbm [shape: f32[16,32], index: 3, kind: output, shape index: {}]  }
   0x1   :  { %v46_v0 = vld [vmem:[%s860_s1 + $0x78] sm:$0xff]  ;;  %v45_v2 = vld [vmem:[%s860_s1 + $0x70] sm:$0xff]  ;;  %v44_v6 = vld [vmem:[%s860_s1 + $0x68] sm:$0xff] }
   0x2   :  { %v78_v1 = vld [vmem:[%s860_s1 + $0x178] sm:$0xff]  ;;  %163 = vmatpush.msra.mxu0 %v46_v0  ;;  %v77_v4 = vld [vmem:[%s860_s1 + $0x170] sm:$0xff]  ;;  %v76_v8 = vld [vmem:[%s860_s1 + $0x168] sm:$0xff] }
   0x3   :  { %209 = vmatpush.msra.mxu2 %v78_v1  ;;  %v62_v3 = vld [vmem:[%s860_s1 + $0xf8] sm:$0xff]  ;;  %v61_v7 = vld [vmem:[%s860_s1 + $0xf0] sm:$0xff]  ;;  %v60_v10 = vld [vmem:[%s860_s1 + $0xe8] sm:$0xff] }
   0x4   :  { %v94_v5 = vld [vmem:[%s860_s1 + $0x1f8] sm:$0xff]  ;;  %186 = vmatpush.msra.mxu1 %v62_v3  ;;  %164 = vmatpush.msra.mxu0 %v45_v2  ;;  %v93_v9 = vld [vmem:[%s860_s1 + $0x1f0] sm:$0xff]  ;;  %v43_v11 = vld [vmem:[%s860_s1 + $0x60] sm:$0xff] }
   0x5   :  { %232 = vmatpush.msra.mxu3 %v94_v5  ;;  %210 = vmatpush.msra.mxu2 %v77_v4  ;;  %v75_v12 = vld [vmem:[%s860_s1 + $0x160] sm:$0xff]  ;;  %v92_v13 = vld [vmem:[%s860_s1 + $0x1e8] sm:$0xff]  ;;  %v42_v16 = vld [vmem:[%s860_s1 + $0x58] sm:$0xff] }
   0x6   :  { %187 = vmatpush.msra.mxu1 %v61_v7  ;;  %165 = vmatpush.msra.mxu0 %v44_v6  ;;  %v59_v14 = vld [vmem:[%s860_s1 + $0xe0] sm:$0xff]  ;;  %v74_v17 = vld [vmem:[%s860_s1 + $0x158] sm:$0xff]  ;;  %v41_v20 = vld [vmem:[%s860_s1 + $0x50] sm:$0xff] }
   0x7   :  { %233 = vmatpush.msra.mxu3 %v93_v9  ;;  %211 = vmatpush.msra.mxu2 %v76_v8  ;;  %v91_v15 = vld [vmem:[%s860_s1 + $0x1e0] sm:$0xff]  ;;  %v58_v18 = vld [vmem:[%s860_s1 + $0xd8] sm:$0xff]  ;;  %v73_v21 = vld [vmem:[%s860_s1 + $0x150] sm:$0xff] }
   0x8   :  { %188 = vmatpush.msra.mxu1 %v60_v10  ;;  %166 = vmatpush.msra.mxu0 %v43_v11  ;;  %v90_v19 = vld [vmem:[%s860_s1 + $0x1d8] sm:$0xff]  ;;  %v57_v22 = vld [vmem:[%s860_s1 + $0xd0] sm:$0xff]  ;;  %v40_v24 = vld [vmem:[%s860_s1 + $0x48] sm:$0xff] }
   0x9   :  { %234 = vmatpush.msra.mxu3 %v92_v13  ;;  %212 = vmatpush.msra.mxu2 %v75_v12  ;;  %v89_v23 = vld [vmem:[%s860_s1 + $0x1d0] sm:$0xff]  ;;  %v72_v25 = vld [vmem:[%s860_s1 + $0x148] sm:$0xff]  ;;  %v39_v28 = vld [vmem:[%s860_s1 + $0x40] sm:$0xff] }
   0xa   :  { %189 = vmatpush.msra.mxu1 %v59_v14  ;;  %167 = vmatpush.msra.mxu0 %v42_v16  ;;  %v56_v26 = vld [vmem:[%s860_s1 + $0xc8] sm:$0xff]  ;;  %v71_v29 = vld [vmem:[%s860_s1 + $0x140] sm:$0xff]  ;;  %v38_v32 = vld [vmem:[%s860_s1 + $0x38] sm:$0xff] }
   0xb   :  { %235 = vmatpush.msra.mxu3 %v91_v15  ;;  %213 = vmatpush.msra.mxu2 %v74_v17  ;;  %v88_v27 = vld [vmem:[%s860_s1 + $0x1c8] sm:$0xff]  ;;  %v55_v30 = vld [vmem:[%s860_s1 + $0xc0] sm:$0xff]  ;;  %v70_v33 = vld [vmem:[%s860_s1 + $0x138] sm:$0xff] }
   0xc   :  { %190 = vmatpush.msra.mxu1 %v58_v18  ;;  %168 = vmatpush.msra.mxu0 %v41_v20  ;;  %v87_v31 = vld [vmem:[%s860_s1 + $0x1c0] sm:$0xff]  ;;  %v54_v34 = vld [vmem:[%s860_s1 + $0xb8] sm:$0xff]  ;;  %v37_v36 = vld [vmem:[%s860_s1 + $0x30] sm:$0xff] }
   0xd   :  { %236 = vmatpush.msra.mxu3 %v90_v19  ;;  %214 = vmatpush.msra.mxu2 %v73_v21  ;;  %v86_v35 = vld [vmem:[%s860_s1 + $0x1b8] sm:$0xff]  ;;  %v69_v37 = vld [vmem:[%s860_s1 + $0x130] sm:$0xff]  ;;  %v36_v40 = vld [vmem:[%s860_s1 + $0x28] sm:$0xff] }
   0xe   :  { %191 = vmatpush.msra.mxu1 %v57_v22  ;;  %169 = vmatpush.msra.mxu0 %v40_v24  ;;  %v53_v38 = vld [vmem:[%s860_s1 + $0xb0] sm:$0xff]  ;;  %v68_v41 = vld [vmem:[%s860_s1 + $0x128] sm:$0xff]  ;;  %v35_v44 = vld [vmem:[%s860_s1 + $0x20] sm:$0xff] }
   0xf   :  { %237 = vmatpush.msra.mxu3 %v89_v23  ;;  %215 = vmatpush.msra.mxu2 %v72_v25  ;;  %v85_v39 = vld [vmem:[%s860_s1 + $0x1b0] sm:$0xff]  ;;  %v52_v42 = vld [vmem:[%s860_s1 + $0xa8] sm:$0xff]  ;;  %v67_v45 = vld [vmem:[%s860_s1 + $0x120] sm:$0xff] }
  0x10   :  { %192 = vmatpush.msra.mxu1 %v56_v26  ;;  %170 = vmatpush.msra.mxu0 %v39_v28  ;;  %v84_v43 = vld [vmem:[%s860_s1 + $0x1a8] sm:$0xff]  ;;  %v51_v46 = vld [vmem:[%s860_s1 + $0xa0] sm:$0xff]  ;;  %v34_v48 = vld [vmem:[%s860_s1 + $0x18] sm:$0xff] }
  0x11   :  { %238 = vmatpush.msra.mxu3 %v88_v27  ;;  %216 = vmatpush.msra.mxu2 %v71_v29  ;;  %v83_v47 = vld [vmem:[%s860_s1 + $0x1a0] sm:$0xff]  ;;  %v66_v49 = vld [vmem:[%s860_s1 + $0x118] sm:$0xff]  ;;  %v33_v52 = vld [vmem:[%s860_s1 + $0x10] sm:$0xff] }
  0x12   :  { %193 = vmatpush.msra.mxu1 %v55_v30  ;;  %171 = vmatpush.msra.mxu0 %v38_v32  ;;  %v50_v50 = vld [vmem:[%s860_s1 + $0x98] sm:$0xff]  ;;  %v65_v53 = vld [vmem:[%s860_s1 + $0x110] sm:$0xff]  ;;  %v32_v56 = vld [vmem:[%s860_s1 + $0x8] sm:$0xff] }
  0x13   :  { %239 = vmatpush.msra.mxu3 %v87_v31  ;;  %217 = vmatpush.msra.mxu2 %v70_v33  ;;  %v82_v51 = vld [vmem:[%s860_s1 + $0x198] sm:$0xff]  ;;  %v49_v54 = vld [vmem:[%s860_s1 + $0x90] sm:$0xff]  ;;  %v64_v57 = vld [vmem:[%s860_s1 + $0x108] sm:$0xff] }
  0x14   :  { %194 = vmatpush.msra.mxu1 %v54_v34  ;;  %172 = vmatpush.msra.mxu0 %v37_v36  ;;  %v81_v55 = vld [vmem:[%s860_s1 + $0x190] sm:$0xff]  ;;  %v48_v58 = vld [vmem:[%s860_s1 + $0x88] sm:$0xff]  ;;  %v31_v60 = vld [vmem:[%s860_s1] sm:$0xff] }
  0x15   :  { %240 = vmatpush.msra.mxu3 %v86_v35  ;;  %218 = vmatpush.msra.mxu2 %v69_v37  ;;  %v80_v59 = vld [vmem:[%s860_s1 + $0x188] sm:$0xff]  ;;  %v63_v61 = vld [vmem:[%s860_s1 + $0x100] sm:$0xff]  ;;  %v110_v62 = vld [vmem:[%s860_s1 + $0x278] sm:$0xff] }
  0x16   :  { %195 = vmatpush.msra.mxu1 %v53_v38  ;;  %173 = vmatpush.msra.mxu0 %v36_v40  ;;  %v142_v63 = vld [vmem:[%s860_s1 + $0x378] sm:$0xff]  ;;  %v47_v0 = vld [vmem:[%s860_s1 + $0x80] sm:$0xff]  ;;  %v109_v2 = vld [vmem:[%s860_s1 + $0x270] sm:$0xff] }
  0x17   :  { %241 = vmatpush.msra.mxu3 %v85_v39  ;;  %219 = vmatpush.msra.mxu2 %v68_v41  ;;  %v79_v1 = vld [vmem:[%s860_s1 + $0x180] sm:$0xff]  ;;  %v126_v3 = vld [vmem:[%s860_s1 + $0x2f8] sm:$0xff]  ;;  %v141_v4 = vld [vmem:[%s860_s1 + $0x370] sm:$0xff] }
  0x18   :  { %196 = vmatpush.msra.mxu1 %v52_v42  ;;  %174 = vmatpush.msra.mxu0 %v35_v44  ;;  %v158_v5 = vld [vmem:[%s860_s1 + $0x3f8] sm:$0xff]  ;;  %v108_v6 = vld [vmem:[%s860_s1 + $0x268] sm:$0xff]  ;;  %v125_v7 = vld [vmem:[%s860_s1 + $0x2f0] sm:$0xff] }
  0x19   :  { %242 = vmatpush.msra.mxu3 %v84_v43  ;;  %220 = vmatpush.msra.mxu2 %v67_v45  ;;  %v140_v8 = vld [vmem:[%s860_s1 + $0x368] sm:$0xff]  ;;  %v157_v9 = vld [vmem:[%s860_s1 + $0x3f0] sm:$0xff]  ;;  %v107_v10 = vld [vmem:[%s860_s1 + $0x260] sm:$0xff] }
  0x1a   :  { %197 = vmatpush.msra.mxu1 %v51_v46  ;;  %175 = vmatpush.msra.mxu0 %v34_v48  ;;  %v124_v11 = vld [vmem:[%s860_s1 + $0x2e8] sm:$0xff]  ;;  %v139_v12 = vld [vmem:[%s860_s1 + $0x360] sm:$0xff]  ;;  %v106_v14 = vld [vmem:[%s860_s1 + $0x258] sm:$0xff] }
  0x1b   :  { %243 = vmatpush.msra.mxu3 %v83_v47  ;;  %221 = vmatpush.msra.mxu2 %v66_v49  ;;  %v156_v13 = vld [vmem:[%s860_s1 + $0x3e8] sm:$0xff]  ;;  %v123_v15 = vld [vmem:[%s860_s1 + $0x2e0] sm:$0xff]  ;;  %v138_v16 = vld [vmem:[%s860_s1 + $0x358] sm:$0xff] }
  0x1c   :  { %198 = vmatpush.msra.mxu1 %v50_v50  ;;  %176 = vmatpush.msra.mxu0 %v33_v52  ;;  %v155_v17 = vld [vmem:[%s860_s1 + $0x3e0] sm:$0xff]  ;;  %v105_v18 = vld [vmem:[%s860_s1 + $0x250] sm:$0xff]  ;;  %v122_v19 = vld [vmem:[%s860_s1 + $0x2d8] sm:$0xff] }
  0x1d   :  { %244 = vmatpush.msra.mxu3 %v82_v51  ;;  %222 = vmatpush.msra.mxu2 %v65_v53  ;;  %v137_v20 = vld [vmem:[%s860_s1 + $0x350] sm:$0xff]  ;;  %v154_v21 = vld [vmem:[%s860_s1 + $0x3d8] sm:$0xff]  ;;  %v104_v22 = vld [vmem:[%s860_s1 + $0x248] sm:$0xff] }
  0x1e   :  { %199 = vmatpush.msra.mxu1 %v49_v54  ;;  %177 = vmatpush.msra.mxu0 %v32_v56  ;;  %v121_v23 = vld [vmem:[%s860_s1 + $0x2d0] sm:$0xff]  ;;  %v136_v24 = vld [vmem:[%s860_s1 + $0x348] sm:$0xff]  ;;  %v103_v26 = vld [vmem:[%s860_s1 + $0x240] sm:$0xff] }
  0x1f   :  { %245 = vmatpush.msra.mxu3 %v81_v55  ;;  %223 = vmatpush.msra.mxu2 %v64_v57  ;;  %v153_v25 = vld [vmem:[%s860_s1 + $0x3d0] sm:$0xff]  ;;  %v120_v27 = vld [vmem:[%s860_s1 + $0x2c8] sm:$0xff]  ;;  %v135_v28 = vld [vmem:[%s860_s1 + $0x340] sm:$0xff] }
  0x20   :  { %200 = vmatpush.msra.mxu1 %v48_v58  ;;  %178 = vmatpush.msra.mxu0 %v31_v60  ;;  %v152_v29 = vld [vmem:[%s860_s1 + $0x3c8] sm:$0xff]  ;;  %v15_v30 = vld [vmem:[%s859_s0] sm:$0xff]  ;;  %v17_v31 = vld [vmem:[%s859_s0 + $0x10] sm:$0xff] }
  0x21   :  { %246 = vmatpush.msra.mxu3 %v80_v59  ;;  %224 = vmatpush.msra.mxu2 %v63_v61  ;;  %v102_v32 = vld [vmem:[%s860_s1 + $0x238] sm:$0xff]  ;;  %v119_v33 = vld [vmem:[%s860_s1 + $0x2c0] sm:$0xff]  ;;  %v16_v36 = vld [vmem:[%s859_s0 + $0x8] sm:$0xff] }
  0x22   :  { %255 = vmatpush.msrb.mxu0 %v110_v62  ;;  %201 = vmatpush.msra.mxu1 %v47_v0  ;;  %v134_v34 = vld [vmem:[%s860_s1 + $0x338] sm:$0xff]  ;;  %v151_v35 = vld [vmem:[%s860_s1 + $0x3c0] sm:$0xff] }
  0x23   :  { %301 = vmatpush.msrb.mxu2 %v142_v63  ;;  %247 = vmatpush.msra.mxu3 %v79_v1  ;;  %v18_v37 = vld [vmem:[%s859_s0 + $0x18] sm:$0xff] }
  0x24   :  { %256 = vmatpush.msrb.mxu0 %v109_v2  ;;  %278 = vmatpush.msrb.mxu1 %v126_v3 }
  0x25   :  { %302 = vmatpush.msrb.mxu2 %v141_v4  ;;  %324 = vmatpush.msrb.mxu3 %v158_v5 }
  0x26   :  { %257 = vmatpush.msrb.mxu0 %v108_v6  ;;  %279 = vmatpush.msrb.mxu1 %v125_v7 }
  0x27   :  { %303 = vmatpush.msrb.mxu2 %v140_v8  ;;  %325 = vmatpush.msrb.mxu3 %v157_v9 }
  0x28   :  { %258 = vmatpush.msrb.mxu0 %v107_v10  ;;  %280 = vmatpush.msrb.mxu1 %v124_v11 }
  0x29   :  { %304 = vmatpush.msrb.mxu2 %v139_v12  ;;  %326 = vmatpush.msrb.mxu3 %v156_v13 }
  0x2a   :  { %259 = vmatpush.msrb.mxu0 %v106_v14  ;;  %281 = vmatpush.msrb.mxu1 %v123_v15 }
  0x2b   :  { %305 = vmatpush.msrb.mxu2 %v138_v16  ;;  %327 = vmatpush.msrb.mxu3 %v155_v17 }
  0x2c   :  { %260 = vmatpush.msrb.mxu0 %v105_v18  ;;  %282 = vmatpush.msrb.mxu1 %v122_v19 }
  0x2d   :  { %306 = vmatpush.msrb.mxu2 %v137_v20  ;;  %328 = vmatpush.msrb.mxu3 %v154_v21 }
  0x2e   :  { %261 = vmatpush.msrb.mxu0 %v104_v22  ;;  %283 = vmatpush.msrb.mxu1 %v121_v23 }
  0x2f   :  { %307 = vmatpush.msrb.mxu2 %v136_v24  ;;  %329 = vmatpush.msrb.mxu3 %v153_v25 }
  0x30   :  { %262 = vmatpush.msrb.mxu0 %v103_v26  ;;  %284 = vmatpush.msrb.mxu1 %v120_v27 }
  0x31   :  { %308 = vmatpush.msrb.mxu2 %v135_v28  ;;  %330 = vmatpush.msrb.mxu3 %v152_v29 }
  0x32   :  { %179 = vmatmul.f32.vlgmr.msra.gmra.mxu0 %v15_v30  ;;  %225 = vmatmul.f32.vlgmr.msra.gmra.mxu2 %v17_v31 }
  0x33   :  { %8 = vsyncpa [#allocation3], 0  ;;  %263 = vmatpush.msrb.mxu0 %v102_v32  ;;  %285 = vmatpush.msrb.mxu1 %v119_v33  ;;  %v101_v38 = vld [vmem:[%s860_s1 + $0x230] sm:$0xff]  ;;  %v118_v39 = vld [vmem:[%s860_s1 + $0x2b8] sm:$0xff]  ;;  %vm347_vm0 = vcmask 261120   ;;  %s356_s6 = sshll.u32 %s862_s3, 4  ;;  %s357_s6 = int_to_ptr.hbm [resolvable:$true] %s356_s6 }
  0x34   :  { %309 = vmatpush.msrb.mxu2 %v134_v34  ;;  %331 = vmatpush.msrb.mxu3 %v151_v35  ;;  %v133_v40 = vld [vmem:[%s860_s1 + $0x330] sm:$0xff]  ;;  %v150_v41 = vld [vmem:[%s860_s1 + $0x3b8] sm:$0xff]  ;;  %v100_v42 = vld [vmem:[%s860_s1 + $0x228] sm:$0xff]  ;;  %s399_s7 = smov 128   ;;  %s400_s8 = smov 8  }
  0x35   :  { %202 = vmatmul.f32.vlgmr.msra.gmra.mxu1 %v16_v36  ;;  %248 = vmatmul.f32.vlgmr.msra.gmra.mxu3 %v18_v37  ;;  %v117_v43 = vld [vmem:[%s860_s1 + $0x2b0] sm:$0xff]  ;;  %v132_v44 = vld [vmem:[%s860_s1 + $0x328] sm:$0xff]  ;;  %v99_v46 = vld [vmem:[%s860_s1 + $0x220] sm:$0xff] }
  0x36   :  { %264 = vmatpush.msrb.mxu0 %v101_v38  ;;  %286 = vmatpush.msrb.mxu1 %v118_v39  ;;  %v149_v45 = vld [vmem:[%s860_s1 + $0x3b0] sm:$0xff]  ;;  %v116_v47 = vld [vmem:[%s860_s1 + $0x2a8] sm:$0xff]  ;;  %v131_v48 = vld [vmem:[%s860_s1 + $0x320] sm:$0xff] }
  0x37   :  { %310 = vmatpush.msrb.mxu2 %v133_v40  ;;  %332 = vmatpush.msrb.mxu3 %v150_v41  ;;  %v148_v49 = vld [vmem:[%s860_s1 + $0x3a8] sm:$0xff]  ;;  %v23_v50 = vld [vmem:[%s859_s0 + $0x40] sm:$0xff]  ;;  %v25_v51 = vld [vmem:[%s859_s0 + $0x50] sm:$0xff] }
  0x38   :  { %265 = vmatpush.msrb.mxu0 %v100_v42  ;;  %287 = vmatpush.msrb.mxu1 %v117_v43  ;;  %v98_v52 = vld [vmem:[%s860_s1 + $0x218] sm:$0xff]  ;;  %v115_v53 = vld [vmem:[%s860_s1 + $0x2a0] sm:$0xff]  ;;  %v24_v56 = vld [vmem:[%s859_s0 + $0x48] sm:$0xff] }
  0x39   :  { %311 = vmatpush.msrb.mxu2 %v132_v44  ;;  %333 = vmatpush.msrb.mxu3 %v149_v45  ;;  %v130_v54 = vld [vmem:[%s860_s1 + $0x318] sm:$0xff]  ;;  %v147_v55 = vld [vmem:[%s860_s1 + $0x3a0] sm:$0xff]  ;;  %v97_v58 = vld [vmem:[%s860_s1 + $0x210] sm:$0xff] }
  0x3a   :  { %266 = vmatpush.msrb.mxu0 %v99_v46  ;;  %288 = vmatpush.msrb.mxu1 %v116_v47  ;;  %v26_v57 = vld [vmem:[%s859_s0 + $0x58] sm:$0xff]  ;;  %v129_v60 = vld [vmem:[%s860_s1 + $0x310] sm:$0xff]  ;;  %v96_v62 = vld [vmem:[%s860_s1 + $0x208] sm:$0xff] }
  0x3b   :  { %312 = vmatpush.msrb.mxu2 %v131_v48  ;;  %334 = vmatpush.msrb.mxu3 %v148_v49  ;;  %v114_v59 = vld [vmem:[%s860_s1 + $0x298] sm:$0xff]  ;;  %v113_v63 = vld [vmem:[%s860_s1 + $0x290] sm:$0xff]  ;;  %v128_v0 = vld [vmem:[%s860_s1 + $0x308] sm:$0xff] }
  0x3c   :  { %182 = vmatmul.f32.gmra.mxu0 %v23_v50  ;;  %228 = vmatmul.f32.gmra.mxu2 %v25_v51  ;;  %v146_v61 = vld [vmem:[%s860_s1 + $0x398] sm:$0xff]  ;;  %v145_v1 = vld [vmem:[%s860_s1 + $0x390] sm:$0xff]  ;;  %v95_v2 = vld [vmem:[%s860_s1 + $0x200] sm:$0xff] }
  0x3d   :  { %267 = vmatpush.msrb.mxu0 %v98_v52  ;;  %289 = vmatpush.msrb.mxu1 %v115_v53  ;;  %v112_v3 = vld [vmem:[%s860_s1 + $0x288] sm:$0xff]  ;;  %v127_v4 = vld [vmem:[%s860_s1 + $0x300] sm:$0xff]  ;;  %v21_v7 = vld [vmem:[%s859_s0 + $0x30] sm:$0xff] }
  0x3e   :  { %313 = vmatpush.msrb.mxu2 %v130_v54  ;;  %335 = vmatpush.msrb.mxu3 %v147_v55  ;;  %v144_v5 = vld [vmem:[%s860_s1 + $0x388] sm:$0xff]  ;;  %v19_v6 = vld [vmem:[%s859_s0 + $0x20] sm:$0xff]  ;;  %v22_v11 = vld [vmem:[%s859_s0 + $0x38] sm:$0xff] }
  0x3f   :  { %205 = vmatmul.f32.gmra.mxu1 %v24_v56  ;;  %251 = vmatmul.f32.gmra.mxu3 %v26_v57  ;;  %v111_v8 = vld [vmem:[%s860_s1 + $0x280] sm:$0xff]  ;;  %v20_v10 = vld [vmem:[%s859_s0 + $0x28] sm:$0xff]  ;;  %v29_v13 = vld [vmem:[%s859_s0 + $0x70] sm:$0xff] }
  0x40   :  { %268 = vmatpush.msrb.mxu0 %v97_v58  ;;  %290 = vmatpush.msrb.mxu1 %v114_v59  ;;  %v143_v9 = vld [vmem:[%s860_s1 + $0x380] sm:$0xff]  ;;  %v28_v14 = vld [vmem:[%s859_s0 + $0x68] sm:$0xff]  ;;  %v30_v15 = vld [vmem:[%s859_s0 + $0x78] sm:$0xff] }
  0x41   :  { %314 = vmatpush.msrb.mxu2 %v129_v60  ;;  %336 = vmatpush.msrb.mxu3 %v146_v61  ;;  %v27_v12 = vld [vmem:[%s859_s0 + $0x60] sm:$0xff]  ;;  %s398_s0 = smov [#allocation2]  }
  0x42   :  { %269 = vmatpush.msrb.mxu0 %v96_v62  ;;  %291 = vmatpush.msrb.mxu1 %v113_v63  ;;  %v371_v17 = vld [vmem:[%s861_s2] ss:$0 sm:$0xff]  ;;  %s354_s2 = sshll.u32 %s398_s0, 4  ;;  %s355_s2 = int_to_ptr.vmem [resolvable:$true] %s354_s2 }
  0x43   :  { %315 = vmatpush.msrb.mxu2 %v128_v0  ;;  %337 = vmatpush.msrb.mxu3 %v145_v1 }
  0x44   :  { %270 = vmatpush.msrb.mxu0 %v95_v2  ;;  %292 = vmatpush.msrb.mxu1 %v112_v3 }
  0x45   :  { %316 = vmatpush.msrb.mxu2 %v127_v4  ;;  %338 = vmatpush.msrb.mxu3 %v144_v5 }
  0x46   :  { %271 = vmatmul.f32.vlgmr.msrb.gmra.mxu0 %v19_v6  ;;  %317 = vmatmul.f32.vlgmr.msrb.gmra.mxu2 %v21_v7 }
  0x47   :  { %293 = vmatpush.msrb.mxu1 %v111_v8  ;;  %339 = vmatpush.msrb.mxu3 %v143_v9 }
  0x48   :  { %294 = vmatmul.f32.vlgmr.msrb.gmra.mxu1 %v20_v10  ;;  %340 = vmatmul.f32.vlgmr.msrb.gmra.mxu3 %v22_v11 }
  0x4e   :  { %274 = vmatmul.f32.gmra.mxu0 %v27_v12  ;;  %320 = vmatmul.f32.gmra.mxu2 %v29_v13 }
  0x50   :  { %297 = vmatmul.f32.gmra.mxu1 %v28_v14  ;;  %343 = vmatmul.f32.gmra.mxu3 %v30_v15 }
  0xaf   :  { %v180_v16 = vpop.f32.mrf.mxu0 }
  0xb0   :  { %v181_v20 = vadd.f32 %v371_v17, %v180_v16 }
  0xb2   :  { %v203_v18 = vpop.f32.mrf.mxu1 }
  0xb3   :  { %v204_v23 = vadd.f32 %v203_v18, %v181_v20 }
  0xb5   :  { %v226_v19 = vpop.f32.mrf.mxu2 }
  0xb6   :  { %v227_v25 = vadd.f32 %v226_v19, %v204_v23 }
  0xb8   :  { %v249_v21 = vpop.f32.mrf.mxu3 }
  0xb9   :  { %v183_v22 = vpop.f32.mrf.mxu0  ;;  %v250_v28 = vadd.f32 %v249_v21, %v227_v25 }
  0xba   :  { %v184_v26 = vadd.f32 %v371_v17, %v183_v22 }
  0xbc   :  { %v206_v24 = vpop.f32.mrf.mxu1 }
  0xbd   :  { %v207_v29 = vadd.f32 %v206_v24, %v184_v26 }
  0xbf   :  { %v229_v27 = vpop.f32.mrf.mxu2 }
  0xc0   :  { %v230_v34 = vadd.f32 %v229_v27, %v207_v29 }
  0xc2   :  { %v252_v30 = vpop.f32.mrf.mxu3 }
  0xc3   :  { %v272_v31 = vpop.f32.mrf.mxu0  ;;  %v253_v37 = vadd.f32 %v252_v30, %v230_v34 }
  0xc4   :  { %v273_v32 = vadd.f32 %v272_v31, %v250_v28 }
  0xc5   :  { %v295_v33 = vpop.f32.mrf.mxu1 }
  0xc6   :  { %v296_v35 = vadd.f32 %v295_v33, %v273_v32 }
  0xc9   :  { %v318_v36 = vpop.f32.mrf.mxu2 }
  0xca   :  { %v319_v38 = vadd.f32 %v318_v36, %v296_v35 }
  0xcb   :  { %v275_v39 = vpop.f32.mrf.mxu0  ;;  %v341_v40 = vpop.f32.mrf.mxu3 }
  0xcc   :  { %v276_v41 = vadd.f32 %v275_v39, %v253_v37  ;;  %v342_v42 = vadd.f32 %v341_v40, %v319_v38 }
  0xcd   :  { %v298_v43 = vpop.f32.mrf.mxu1 }
  0xce   :  { %348 = vst.msk [vmem:[#allocation2] sm:$0xff] %vm347_vm0, %v342_v42  ;;  %v299_v44 = vadd.f32 %v298_v43, %v276_v41 }
  0xd1   :  { %v321_v45 = vpop.f32.mrf.mxu2 }
  0xd2   :  { %v322_v46 = vadd.f32 %v321_v45, %v299_v44 }
  0xd3   :  { %v344_v47 = vpop.f32.mrf.mxu3 }
  0xd4   :  { %v345_v48 = vadd.f32 %v344_v47, %v322_v46 }
  0xd6   :  { %349 = vst.msk [vmem:[#allocation2 + $0x8] sm:$0xff] %vm347_vm0, %v345_v48 }
  0xd7   :  { %362 = dma.vmem_to_hbm [thread:$0]  %s355_s2, 256, %s357_s6, [#allocation3], %s399_s7, %s399_s7, %s400_s8  }
  0xd8   :  { %396 = dma.done.wait [#allocation3], 256  }
  0xd9   :  { %397 = vsyncadd [#allocation3], 4294967040 }
  0xda   :  { %367 = vsyncpa [#allocation3], 1 }

</bundles_post_ra>
